<compile_context>
chip_gen: v7x
topology: tpu7x:2x2x1
jax: 0.10.0
libtpu: 0.0.40
codegen_flags: <defaults>
</compile_context>

<pallas_src>
import jax
import jax.numpy as jnp
from jax import lax
from jax.experimental import pallas as pl
from jax.experimental.pallas import tpu as pltpu


def _qnet_kernel(x_ref, wt_ref, b_ref, ot_ref):
    # x_ref : (TB, D)  compute dtype   (lane-dense: last dim = D)
    # wt_ref: (A,  D)  compute dtype   (torch nn.Linear layout, lane-dense)
    # b_ref : (A,  1)  f32             (resident, loaded once)
    # ot_ref: (A, TB)  f32             (batch on the lane axis)
    acc = lax.dot_general(
        wt_ref[...], x_ref[...],
        dimension_numbers=(((1,), (1,)), ((), ())),   # contract the D dims
        preferred_element_type=jnp.float32)           # f32 accumulation
    ot_ref[...] = (acc + b_ref[...]).astype(ot_ref.dtype)


def linear_qnet_forward(state, weight, bias, *, block_b=512,
                        compute_dtype=jnp.bfloat16):
    """Forward pass of LinearQNet.

    Args:
      state : (batch, H, W, C*history) array.
      weight: (num_actions, D) array -- PyTorch nn.Linear (out, in) layout.
      bias  : (num_actions,) array.
      block_b: batch tile (rows of x per grid step) once batch > block_b.
      compute_dtype: MXU operand dtype (bf16 default; f32 for exact semantics).

    Returns:
      q_values: (batch, num_actions) float32.
    """
    batch = state.shape[0]
    x = state.reshape(batch, -1)                      # glue: flatten (plain JAX)
    A, D = weight.shape
    assert x.shape[1] == D, (x.shape, weight.shape)

    # MXU operands in compute dtype; bias stays f32 for the f32-accumulator add.
    x_c = x.astype(compute_dtype)
    w_c = weight.astype(compute_dtype)
    b_c = bias.reshape(A, 1).astype(jnp.float32)

    # Single block for small batches (block == full dim satisfies the (8,128)
    # rule); otherwise 128-multiple batch tiles -> lane-dense, unmasked output
    # stores and a double-buffered x stream with resident weights.
    tb = batch if batch <= block_b else block_b
    grid = (pl.cdiv(batch, tb),)

    out_t = pl.pallas_call(
        _qnet_kernel,
        out_shape=jax.ShapeDtypeStruct((A, batch), jnp.float32),
        grid_spec=pl.GridSpec(
            grid=grid,
            in_specs=[
                pl.BlockSpec((tb, D), lambda i: (i, 0)),   # x tiles stream
                pl.BlockSpec((A, D), lambda i: (0, 0)),    # weight VMEM-resident
                pl.BlockSpec((A, 1), lambda i: (0, 0)),    # bias VMEM-resident
            ],
            out_specs=pl.BlockSpec((A, tb), lambda i: (0, i)),
        ),
        compiler_params=pltpu.CompilerParams(
            dimension_semantics=("parallel",)),            # megacore on v7x
    )(x_c, w_c, b_c)

    # out^T -> (batch, A): cheap plumbing on a tiny (A, batch) slab.
    return out_t.T


if __name__ == "__main__":
    # Shapes implied by the module:
    #   env.observation_space.shape = (H, W, C) = (16, 16, 4)
    #   config.state_history = 1  -> num_state_vals = 16*16*4 = 1024
    #   env.action_space.n = 4
    batch, H, W, C, history, num_actions = 2, 16, 16, 4, 1, 4
    D = H * W * C * history

    key = jax.random.PRNGKey(0)
    k_x, k_w, k_b = jax.random.split(key, 3)

    # nn.Linear-style init; weight kept in torch's (out_features, in_features).
    bound = 1.0 / (D ** 0.5)
    weight = jax.random.uniform(k_w, (num_actions, D), jnp.float32, -bound, bound)
    bias = jax.random.uniform(k_b, (num_actions,), jnp.float32, -bound, bound)
    state = jax.random.normal(k_x, (batch, H, W, C * history), jnp.float32)

    x_flat = state.reshape(batch, -1)

    # 1) f32 path: exact semantics of the PyTorch module.
    q_f32 = jax.block_until_ready(
        linear_qnet_forward(state, weight, bias, compute_dtype=jnp.float32))
    ref_f32 = x_flat @ weight.T + bias
    assert q_f32.shape == (batch, num_actions)
    assert jnp.allclose(q_f32, ref_f32, atol=1e-4, rtol=1e-4), (
        float(jnp.max(jnp.abs(q_f32 - ref_f32))))

    # 2) bf16-operand path (default; full-rate MXU), f32 accumulation.
    q_bf16 = jax.block_until_ready(linear_qnet_forward(state, weight, bias))
    ref_bf16 = jnp.dot(x_flat.astype(jnp.bfloat16),
                       weight.astype(jnp.bfloat16).T,
                       preferred_element_type=jnp.float32) + bias
    assert q_bf16.shape == (batch, num_actions)
    assert jnp.allclose(q_bf16, ref_bf16, atol=1e-3, rtol=1e-3), (
        float(jnp.max(jnp.abs(q_bf16 - ref_bf16))))
    # bf16 operands stay close to the exact f32 result (fine for a Q-net).
    assert jnp.allclose(q_bf16, ref_f32, atol=5e-2, rtol=5e-2)

    print("KERNEL_OK")
</pallas_src>

<mosaic_0001>
module attributes {stable_mosaic.version = 11 : i64} {
  func.func @_qnet_kernel(%arg0: i32, %arg1: memref<2x1024xf32, #tpu.memory_space<vmem>>, %arg2: memref<4x1024xf32, #tpu.memory_space<vmem>>, %arg3: memref<4x1xf32, #tpu.memory_space<vmem>>, %arg4: memref<4x2xf32, #tpu.memory_space<vmem>>) attributes {dimension_semantics = [#tpu.dimension_semantics<parallel>], iteration_bounds = array<i64: 1>, scalar_prefetch = 0 : i64, scratch_operands = 0 : i64, tpu.core_type = #tpu.core_type<tc>, window_params = [{transform_indices = @transform_0, window_bounds = array<i64: 2, 1024>}, {pipeline_mode = #tpu.pipeline_mode<synchronous>, transform_indices = @transform_1, window_bounds = array<i64: 4, 1024>}, {pipeline_mode = #tpu.pipeline_mode<synchronous>, transform_indices = @transform_2, window_bounds = array<i64: 4, 1>}, {transform_indices = @transform_3, window_bounds = array<i64: 4, 2>}]} {
    %c0 = arith.constant 0 : index
    %c0_0 = arith.constant 0 : index
    %0 = vector.load %arg2[%c0, %c0_0] : memref<4x1024xf32, #tpu.memory_space<vmem>>, vector<4x1024xf32>
    %c0_1 = arith.constant 0 : index
    %c0_2 = arith.constant 0 : index
    %1 = vector.load %arg1[%c0_1, %c0_2] : memref<2x1024xf32, #tpu.memory_space<vmem>>, vector<2x1024xf32>
    %cst = arith.constant dense<0.000000e+00> : vector<4x2xf32>
    %2 = tpu.matmul %0, %1, %cst {dimension_numbers = #tpu.dot_dimension_numbers<[1], [1], [0], [0], [0, 0, 1, 0], [], []>} : vector<4x1024xf32>, vector<2x1024xf32>, vector<4x2xf32> -> vector<4x2xf32>
    %c0_3 = arith.constant 0 : index
    %c0_4 = arith.constant 0 : index
    %3 = vector.load %arg3[%c0_3, %c0_4] : memref<4x1xf32, #tpu.memory_space<vmem>>, vector<4x1xf32>
    %4 = vector.broadcast %3 : vector<4x1xf32> to vector<4x2xf32>
    %5 = arith.addf %2, %4 : vector<4x2xf32>
    %c0_5 = arith.constant 0 : index
    %c0_6 = arith.constant 0 : index
    %6 = vector.load %arg4[%c0_5, %c0_6] : memref<4x2xf32, #tpu.memory_space<vmem>>, vector<4x2xf32>
    tpu.vector_store %arg4[%c0_5, %c0_6], %5 {strides = array<i32>} : memref<4x2xf32, #tpu.memory_space<vmem>>, vector<4x2xf32>,
    return
  }
  func.func @transform_0(%arg0: i32) -> (i32, i32) {
    %c0_i32 = arith.constant 0 : i32
    %c0_i32_0 = arith.constant 0 : i32
    return %arg0, %c0_i32 : i32, i32
  }
  func.func @transform_1(%arg0: i32) -> (i32, i32) {
    %c0_i32 = arith.constant 0 : i32
    %c0_i32_0 = arith.constant 0 : i32
    %c0_i32_1 = arith.constant 0 : i32
    return %c0_i32, %c0_i32_0 : i32, i32
  }
  func.func @transform_2(%arg0: i32) -> (i32, i32) {
    %c0_i32 = arith.constant 0 : i32
    %c0_i32_0 = arith.constant 0 : i32
    %c0_i32_1 = arith.constant 0 : i32
    return %c0_i32, %c0_i32_0 : i32, i32
  }
  func.func @transform_3(%arg0: i32) -> (i32, i32) {
    %c0_i32 = arith.constant 0 : i32
    %c0_i32_0 = arith.constant 0 : i32
    return %c0_i32, %arg0 : i32, i32
  }
}

</mosaic_0001>

<bundles_post_ra>
// kernel: tpu_custom_call.1
= control target key start
LH: loop header
LB: loop body
LE: loop exit
PB: predicated region body
PF: predicated region fallthrough
CT: control target
= control target key end

     0   :  { %8 = vsyncpa [#allocation3], 0  ;;  %s513_s0 = inlined_call_operand.hbm [shape: f32[2,1024], index: 0, kind: input, shape index: {}]   ;;  %s514_s1 = inlined_call_operand.hbm [shape: f32[4,1024], index: 1, kind: input, shape index: {}]   ;;  %s515_s2 = inlined_call_operand.vmem [shape: f32[4,1], index: 2, kind: input, shape index: {}]   ;;  %s516_s3 = inlined_call_operand.vmem [shape: f32[4,2], index: 3, kind: output, shape index: {}]  }
   0x1   :  { %9 = vsyncpa [#allocation5], 0  ;;  %s459_s12 = smov [#allocation2]   ;;  %s460_s14 = smov [#allocation4]  }
   0x2   :  { %s16_s13 = sshll.u32 %s459_s12, 4  ;;  %s26_s15 = sshll.u32 %s460_s14, 4  ;;  %s17_s13 = int_to_ptr.vmem [resolvable:$true] %s16_s13  ;;  %s27_s15 = int_to_ptr.vmem [resolvable:$true] %s26_s15 }
   0x3   :  { %s411_s18 = scalar_lea.hbm %s513_s0, 256 }
   0x4   :  { %p412_p0 = scmp.ne.s32.totalorder %s513_s0, %s411_s18  ;;  %p415_p1 = scmp.lt.u32.totalorder %s411_s18, %s513_s0 }
   0x6   :  { %p417_p2 = pnand %p415_p1, %p412_p0 }
   0x8   :  { %420 = shalt.err (!%p417_p2)
}
   0x9   :  { %s421_s23 = scalar_lea.vmem %s17_s13, 256  ;;  %p426_p4 = scmp.lt.s32.totalorder %s17_s13, %s17_s13 }
   0xa   :  { %p422_p3 = scmp.ne.s32.totalorder %s17_s13, %s421_s23  ;;  %p427_p5 = scmp.lt.s32.totalorder %s421_s23, %s421_s23 }
   0xc   :  { %p428_p6 = por %p427_p5, %p426_p4 }
   0xe   :  { %p429_p7 = pnand %p428_p6, %p422_p3 }
  0x10   :  { %432 = shalt.err (!%p429_p7)
}
  0x11   :  { %19 = dma.hbm_to_vmem [thread:$0]  %s513_s0, 256, %s17_s13, [#allocation3]  }
  0x12   :  { %s433_s28 = scalar_lea.hbm %s514_s1, 512 }
  0x13   :  { %p434_p8 = scmp.ne.s32.totalorder %s514_s1, %s433_s28  ;;  %p437_p9 = scmp.lt.u32.totalorder %s433_s28, %s514_s1 }
  0x15   :  { %p439_p10 = pnand %p437_p9, %p434_p8 }
  0x17   :  { %442 = shalt.err (!%p439_p10)
}
  0x18   :  { %s443_s6 = scalar_lea.vmem %s27_s15, 512  ;;  %p448_p12 = scmp.lt.s32.totalorder %s27_s15, %s27_s15 }
  0x19   :  { %p444_p11 = scmp.ne.s32.totalorder %s27_s15, %s443_s6  ;;  %p449_p13 = scmp.lt.s32.totalorder %s443_s6, %s443_s6 }
  0x1b   :  { %p450_p0 = por %p449_p13, %p448_p12 }
  0x1d   :  { %p451_p1 = pnand %p450_p0, %p444_p11 }
  0x1f   :  { %454 = shalt.err (!%p451_p1)
}
  0x20   :  { %29 = dma.hbm_to_vmem [thread:$0]  %s514_s1, 512, %s27_s15, [#allocation5]  }
  0x21   :  { %455 = dma.done.wait [#allocation3], 256  }
  0x22   :  { %456 = vsyncadd [#allocation3], 4294967040 }
  0x23   :  { %457 = dma.done.wait [#allocation5], 512  }
  0x24   :  { %458 = vsyncadd [#allocation5], 4294966784  ;;  %v68_v0 = vlaneseq  ;;  %v461_v1 = vmov 1983009808   ;;  %v462_v3 = vmov 0   ;;  %v42_v7 = vld [vmem:[#allocation2] sm:$0xff] }
  0x25   :  { %v66_v2 = vunpack.c.l.s4 %v461_v1  ;;  %404 = vset.pattern.permute.xlu0 %v462_v3  ;;  %v43_v8 = vld [vmem:[#allocation2 + $0x8] sm:$0xff]  ;;  %v38_v9 = vld [vmem:[#allocation4] sm:$0xff]  ;;  %v64_v10 = vcombine.high %v42_v7, %v42_v7  ;;  %v40_v14 = vld [vmem:[#allocation4 + $0x10] sm:$0xff]  ;;  %vm386_vm0 = vcmask 11264  }
  0x26   :  { %v69_v4 = vshrl.u32 %v68_v0, 7  ;;  %v81_v12 = vcombine.high %v43_v8, %v43_v8  ;;  %v54_v15 = vcombine.high %v38_v9, %v38_v9  ;;  %v56_v16 = vcombine.high %v40_v14, %v40_v14  ;;  %v44_v17 = vld [vmem:[%s515_s2] sm:$0xf]  ;;  %v39_v22 = vld [vmem:[#allocation4 + $0x8] sm:$0xff]  ;;  %v41_v23 = vld [vmem:[#allocation4 + $0x18] sm:$0xff] }
  0x27   :  { %v67_v5 = vunpack.c.0.s8 %v66_v2  ;;  %47 = vperm.xlu0 %404, %v44_v17   ;;  %v55_v26 = vcombine.high %v39_v22, %v39_v22  ;;  %v57_v27 = vcombine.high %v41_v23, %v41_v23 }
  0x28   :  { %170 = vmatprep.mubr.f32.mxu1 %v54_v15  ;;  %310 = vmatprep.mubr.f32.mxu0 %v56_v16 }
  0x29   :  { %v70_v6 = vsub.s32 %v67_v5, %v69_v4 }
  0x2b   :  { %v71_v11 = vrot.slane %v42_v7, %v70_v6  ;;  %v88_v13 = vrot.slane %v43_v8, %v70_v6  ;;  %v78_v20 = vrot.slane %v64_v10, %v70_v6  ;;  %v95_v21 = vrot.slane %v81_v12, %v70_v6 }
  0x2d   :  { %v79_v18 = vcombine.high %v71_v11, %v71_v11  ;;  %v96_v19 = vcombine.high %v88_v13, %v88_v13  ;;  %v80_v24 = vcombine.high %v78_v20, %v78_v20  ;;  %v97_v25 = vcombine.high %v95_v21, %v95_v21 }
  0x2f   :  { %106 = vmatprep.subr.mxu1 %v79_v18  ;;  %246 = vmatprep.subr.mxu0 %v96_v19 }
  0x30   :  { %107 = vmatpush1.xpose.msra.mxu1 %v71_v11  ;;  %247 = vmatpush1.xpose.msra.mxu0 %v88_v13 }
  0x31   :  { %176 = vmatprep.subr.mxu1 %v80_v24  ;;  %316 = vmatprep.subr.mxu0 %v97_v25 }
  0x33   :  { %171 = vmatmul.mubr.f32.vlgmr.msra.gmra.mrb[0].mxu1 %v38_v9  ;;  %311 = vmatmul.mubr.f32.vlgmr.msra.gmra.mrb[0].mxu0 %v40_v14 }
  0x34   :  { %177 = vmatpush1.xpose.msra.mxu1 %v78_v20  ;;  %317 = vmatpush1.xpose.msra.mxu0 %v95_v21 }
  0x35   :  { %240 = vmatprep.mubr.f32.mxu1 %v55_v26  ;;  %380 = vmatprep.mubr.f32.mxu0 %v57_v27 }
  0x3b   :  { %241 = vmatmul.mubr.f32.vlgmr.msra.gmra.mrb[0].mxu1 %v39_v22  ;;  %381 = vmatmul.mubr.f32.vlgmr.msra.gmra.mrb[0].mxu0 %v41_v23 }
  0xa6   :  { %v48_v28 = vpop.permute.xlu0 %47 }
 0x10e   :  { %v242_v29 = vpop.f32.mrb[0].mxu1  ;;  %v382_v30 = vpop.f32.mrb[0].mxu0 }
 0x10f   :  { %v394_v31 = vadd.f32 %v242_v29, %v48_v28  ;;  %v244_v32 = vpop.f32.mrb[1].mxu1  ;;  %v384_v33 = vpop.f32.mrb[1].mxu0 }
 0x111   :  { %v395_v34 = vadd.f32 %v394_v31, %v382_v30 }
 0x113   :  { %387 = vst.msk [vmem:[%s516_s3] sm:$0xf] %vm386_vm0, %v395_v34 }
 0x114   :  { %392 = vsyncpa [#allocation3], 1 }
 0x115   :  { %393 = vsyncpa [#allocation5], 1 }

</bundles_post_ra>
